<compile_context>
chip_gen: v5e
topology: v5e:2x2
jax: 0.10.0
libtpu: 0.0.40
codegen_flags: <defaults>
</compile_context>

<pallas_src>
import math
from functools import partial

import jax
import jax.numpy as jnp
from jax.experimental import pallas as pl
from jax.experimental.pallas import tpu as pltpu

BIAS_COLS = 8  # bias stack lane width (columns 0..2 real, rest zero)


def _round_up(n, m):
    return ((n + m - 1) // m) * m


def _cdiv(a, b):
    return -(-a // b)


def _pad2d(a, rows, cols):
    return jnp.zeros((rows, cols), a.dtype).at[: a.shape[0], : a.shape[1]].set(a)


# ---------------------------------------------------------------------------
# Pallas kernel: 3-layer MLP, feature-major activations (F on sublanes,
# batch on lanes).  Standardization already folded into W1'/b1'.
# ---------------------------------------------------------------------------
def feedforward_kernel(z_ref, w1_ref, w2_ref, w3_ref, b_ref, out_ref):
    z = z_ref[...]                      # (F_ROWS, TB)   f32
    b = b_ref[...]                      # (BROWS, 8)     f32

    h = jnp.dot(w1_ref[...], z.astype(w1_ref.dtype),
                preferred_element_type=jnp.float32)        # (H1, TB)
    h = jnp.tanh(h + b[: h.shape[0], 0:1])
    h = jnp.dot(w2_ref[...], h.astype(w2_ref.dtype),
                preferred_element_type=jnp.float32)        # (H2, TB)
    h = jnp.tanh(h + b[: h.shape[0], 1:2])
    h = jnp.dot(w3_ref[...], h.astype(w3_ref.dtype),
                preferred_element_type=jnp.float32)        # (OUT_ROWS, TB)
    out_ref[...] = (h + b[: h.shape[0], 2:3]).astype(out_ref.dtype)


# ---------------------------------------------------------------------------
# One-time parameter preparation (hoisted out of the forward path)
# ---------------------------------------------------------------------------
def prepare_params(params, mean, std, dim, weight_dtype=jnp.float32):
    """Fold standardization into layer 1, transpose, pad, stack biases.

    params: [(W1[in,h1], b1), (W2[h1,h2], b2), (W3[h2,out], b3)]
    Returns (w1t, w2t, w3t, bias_stack) ready for feedforward_pallas.
    W1 (carrying the folded 1/std scale) is always kept in f32; W2/W3 may be
    cast to `weight_dtype` (bf16 is safe & free on v5e/v6e/v7x).
    """
    assert len(params) == 3, "kernel is specialized to two hidden layers"
    dim_in = dim + 1
    mean_vec = jnp.array([mean[0]] * dim + [mean[1]], jnp.float32)
    std_vec = jnp.array([std[0]] * dim + [std[1]], jnp.float32)

    w1, b1 = params[0][0].astype(jnp.float32), params[0][1].astype(jnp.float32)
    w2, b2 = params[1][0].astype(jnp.float32), params[1][1].astype(jnp.float32)
    w3, b3 = params[2][0].astype(jnp.float32), params[2][1].astype(jnp.float32)
    assert w1.shape[0] == dim_in

    # (z - mean)/std @ W1 + b1 == z @ (W1/std[:,None]) + (b1 - (mean/std) @ W1)
    w1_fold = w1 / std_vec[:, None]
    b1_fold = b1 - (mean_vec / std_vec) @ w1

    h1, h2, dout = w1.shape[1], w2.shape[1], w3.shape[1]
    f_rows = _round_up(dim_in, 8)
    h1p = _round_up(h1, 8)
    h2p = _round_up(h2, 8)
    outp = _round_up(dout, 8)

    # transposed (out, in) weights, zero-padded to sublane multiples of 8
    w1t = _pad2d(w1_fold.T, h1p, f_rows).astype(jnp.float32)       # f32 always
    w2t = _pad2d(w2.T, h2p, h1p).astype(weight_dtype)
    w3t = _pad2d(w3.T, outp, h2p).astype(weight_dtype)

    brows = max(h1p, h2p, outp)
    bias = jnp.zeros((brows, BIAS_COLS), jnp.float32)
    bias = bias.at[:h1, 0].set(b1_fold)
    bias = bias.at[:h2, 1].set(b2)
    bias = bias.at[:dout, 2].set(b3)
    return (w1t, w2t, w3t, bias)


# ---------------------------------------------------------------------------
# Jitted forward: narrow feature-major input, batch grid over lanes
# ---------------------------------------------------------------------------
@partial(jax.jit, static_argnames=("dim_out", "tb"))
def feedforward_pallas(x, t, prepared, *, dim_out, tb=4096):
    w1t, w2t, w3t, bias = prepared
    B, dim = x.shape
    f_rows = w1t.shape[1]           # padded input-feature rows (8)
    out_rows = w3t.shape[0]         # padded output rows (8)

    # batch tile (lane dim): aim for >= ~8 grid steps at large B (megacore +
    # pipelining), never below 128 lanes, never above tb
    tb_eff = max(128, min(tb, _round_up(_cdiv(B, 8), 128)))
    Bp = _round_up(B, tb_eff)
    nb = Bp // tb_eff

    # Narrow feature-major input: (f_rows, Bp); rows 0..dim-1 = x, row dim = t.
    inp = jnp.concatenate([x, t], axis=1).astype(jnp.float32)       # (B, dim+1)
    inp_p = jnp.zeros((f_rows, Bp), jnp.float32).at[: dim + 1, :B].set(inp.T)

    out_p = pl.pallas_call(
        feedforward_kernel,
        out_shape=jax.ShapeDtypeStruct((out_rows, Bp), jnp.float32),
        grid=(nb,),
        in_specs=[
            pl.BlockSpec((f_rows, tb_eff), lambda i: (0, i)),       # input tile
            pl.BlockSpec(w1t.shape, lambda i: (0, 0)),              # W1^T (resident)
            pl.BlockSpec(w2t.shape, lambda i: (0, 0)),              # W2^T (resident)
            pl.BlockSpec(w3t.shape, lambda i: (0, 0)),              # W3^T (resident)
            pl.BlockSpec(bias.shape, lambda i: (0, 0)),             # bias stack
        ],
        out_specs=pl.BlockSpec((out_rows, tb_eff), lambda i: (0, i)),
        compiler_params=pltpu.CompilerParams(
            dimension_semantics=("parallel",)),
    )(inp_p, w1t, w2t, w3t, bias)

    return out_p[:dim_out, :B].T                                    # (B, dim_out)


# ---------------------------------------------------------------------------
# Deterministic parameter construction (PyTorch nn.Linear-style uniform init)
# ---------------------------------------------------------------------------
def make_params(key, dim_in, arch, dim_out):
    sizes = [dim_in] + list(arch) + [dim_out]
    params = []
    for i in range(len(sizes) - 1):
        fan_in, fan_out = sizes[i], sizes[i + 1]
        key, kw, kb = jax.random.split(key, 3)
        bound = 1.0 / math.sqrt(fan_in)
        w = jax.random.uniform(kw, (fan_in, fan_out), jnp.float32, -bound, bound)
        b = jax.random.uniform(kb, (fan_out,), jnp.float32, -bound, bound)
        params.append((w, b))
    return params


# ---------------------------------------------------------------------------
# Pure-JAX reference (mirrors the PyTorch forward exactly)
# ---------------------------------------------------------------------------
def feedforward_ref(x, t, params, mean, std):
    z = jnp.concatenate([(x - mean[0]) / std[0], (t - mean[1]) / std[1]], axis=1)
    for w, b in params[:-1]:
        z = jnp.tanh(z @ w + b)
    w, b = params[-1]
    return z @ w + b


if __name__ == "__main__":
    # Synthetic "problem": dim=4, interval=(0, 1), terminal_time=1.0
    dim = 4
    interval = (0.0, 1.0)
    terminal_time = 1.0
    intervals = [interval, (0.0, terminal_time)]
    mean = [sum(iv) / 2 for iv in intervals]
    std = [(iv[1] - iv[0]) / math.sqrt(12) for iv in intervals]

    arch = [32, 32]          # two hidden layers
    dim_in = dim + 1         # x concat t
    dim_out = 1              # grad_model=False
    batch = 8

    key = jax.random.PRNGKey(0)
    kx, kt, kp = jax.random.split(key, 3)
    x = jax.random.uniform(kx, (batch, dim), jnp.float32, interval[0], interval[1])
    t = jax.random.uniform(kt, (batch, 1), jnp.float32, 0.0, terminal_time)
    params = make_params(kp, dim_in, arch, dim_out)

    # --- small-batch f32 check (single grid step) ---------------------------
    prep_f32 = prepare_params(params, mean, std, dim, weight_dtype=jnp.float32)
    out = jax.block_until_ready(
        feedforward_pallas(x, t, prep_f32, dim_out=dim_out))
    ref = feedforward_ref(x, t, params, mean, std)
    assert out.shape == (batch, dim_out)
    assert jnp.allclose(out, ref, atol=1e-4, rtol=1e-4)

    # --- larger batch exercising the tiled/gridded path (8 grid steps) ------
    kx2, kt2 = jax.random.split(jax.random.PRNGKey(1))
    B2 = 1000
    x2 = jax.random.uniform(kx2, (B2, dim), jnp.float32, interval[0], interval[1])
    t2 = jax.random.uniform(kt2, (B2, 1), jnp.float32, 0.0, terminal_time)
    out2 = jax.block_until_ready(
        feedforward_pallas(x2, t2, prep_f32, dim_out=dim_out))
    ref2 = feedforward_ref(x2, t2, params, mean, std)
    assert out2.shape == (B2, dim_out)
    assert jnp.allclose(out2, ref2, atol=1e-4, rtol=1e-4)

    # --- bf16-weight path (W2/W3 bf16, W1+scale f32, f32 accumulation) ------
    prep_bf16 = prepare_params(params, mean, std, dim, weight_dtype=jnp.bfloat16)
    out3 = jax.block_until_ready(
        feedforward_pallas(x2, t2, prep_bf16, dim_out=dim_out))
    assert jnp.allclose(out3, ref2, atol=5e-2, rtol=5e-2)

    print("KERNEL_OK")
</pallas_src>

<mosaic_0001>
module attributes {stable_mosaic.version = 11 : i64} {
  func.func @feedforward_kernel(%arg0: i32, %arg1: memref<8x128xf32, #tpu.memory_space<vmem>>, %arg2: memref<32x8xf32, #tpu.memory_space<vmem>>, %arg3: memref<32x32xf32, #tpu.memory_space<vmem>>, %arg4: memref<8x32xf32, #tpu.memory_space<vmem>>, %arg5: memref<32x8xf32, #tpu.memory_space<vmem>>, %arg6: memref<8x128xf32, #tpu.memory_space<vmem>>) attributes {dimension_semantics = [#tpu.dimension_semantics<parallel>], iteration_bounds = array<i64: 1>, scalar_prefetch = 0 : i64, scratch_operands = 0 : i64, tpu.core_type = #tpu.core_type<tc>, window_params = [{transform_indices = @transform_0, window_bounds = array<i64: 8, 128>}, {pipeline_mode = #tpu.pipeline_mode<synchronous>, transform_indices = @transform_1, window_bounds = array<i64: 32, 8>}, {pipeline_mode = #tpu.pipeline_mode<synchronous>, transform_indices = @transform_2, window_bounds = array<i64: 32, 32>}, {pipeline_mode = #tpu.pipeline_mode<synchronous>, transform_indices = @transform_3, window_bounds = array<i64: 8, 32>}, {pipeline_mode = #tpu.pipeline_mode<synchronous>, transform_indices = @transform_4, window_bounds = array<i64: 32, 8>}, {transform_indices = @transform_5, window_bounds = array<i64: 8, 128>}]} {
    %c0 = arith.constant 0 : index
    %c0_0 = arith.constant 0 : index
    %0 = vector.load %arg1[%c0, %c0_0] : memref<8x128xf32, #tpu.memory_space<vmem>>, vector<8x128xf32>
    %c0_1 = arith.constant 0 : index
    %c0_2 = arith.constant 0 : index
    %1 = vector.load %arg5[%c0_1, %c0_2] : memref<32x8xf32, #tpu.memory_space<vmem>>, vector<32x8xf32>
    %c0_3 = arith.constant 0 : index
    %c0_4 = arith.constant 0 : index
    %2 = vector.load %arg2[%c0_3, %c0_4] : memref<32x8xf32, #tpu.memory_space<vmem>>, vector<32x8xf32>
    %cst = arith.constant dense<0.000000e+00> : vector<32x128xf32>
    %3 = tpu.matmul %2, %0, %cst {dimension_numbers = #tpu.dot_dimension_numbers<[1], [0], [0], [1], [0, 0, 1, 1], [], []>} : vector<32x8xf32>, vector<8x128xf32>, vector<32x128xf32> -> vector<32x128xf32>
    %4 = vector.extract_strided_slice %1 {offsets = [0, 0], sizes = [32, 1], strides = [1, 1]} : vector<32x8xf32> to vector<32x1xf32>
    %5 = vector.broadcast %4 : vector<32x1xf32> to vector<32x128xf32>
    %6 = arith.addf %3, %5 : vector<32x128xf32>
    %7 = math.tanh %6 : vector<32x128xf32>
    %c0_5 = arith.constant 0 : index
    %c0_6 = arith.constant 0 : index
    %8 = vector.load %arg3[%c0_5, %c0_6] : memref<32x32xf32, #tpu.memory_space<vmem>>, vector<32x32xf32>
    %cst_7 = arith.constant dense<0.000000e+00> : vector<32x128xf32>
    %9 = tpu.matmul %8, %7, %cst_7 {dimension_numbers = #tpu.dot_dimension_numbers<[1], [0], [0], [1], [0, 0, 1, 1], [], []>} : vector<32x32xf32>, vector<32x128xf32>, vector<32x128xf32> -> vector<32x128xf32>
    %10 = vector.extract_strided_slice %1 {offsets = [0, 1], sizes = [32, 1], strides = [1, 1]} : vector<32x8xf32> to vector<32x1xf32>
    %11 = vector.broadcast %10 : vector<32x1xf32> to vector<32x128xf32>
    %12 = arith.addf %9, %11 : vector<32x128xf32>
    %13 = math.tanh %12 : vector<32x128xf32>
    %c0_8 = arith.constant 0 : index
    %c0_9 = arith.constant 0 : index
    %14 = vector.load %arg4[%c0_8, %c0_9] : memref<8x32xf32, #tpu.memory_space<vmem>>, vector<8x32xf32>
    %cst_10 = arith.constant dense<0.000000e+00> : vector<8x128xf32>
    %15 = tpu.matmul %14, %13, %cst_10 {dimension_numbers = #tpu.dot_dimension_numbers<[1], [0], [0], [1], [0, 0, 1, 1], [], []>} : vector<8x32xf32>, vector<32x128xf32>, vector<8x128xf32> -> vector<8x128xf32>
    %16 = vector.extract_strided_slice %1 {offsets = [0, 2], sizes = [8, 1], strides = [1, 1]} : vector<32x8xf32> to vector<8x1xf32>
    %17 = vector.broadcast %16 : vector<8x1xf32> to vector<8x128xf32>
    %18 = arith.addf %15, %17 : vector<8x128xf32>
    %c0_11 = arith.constant 0 : index
    %c0_12 = arith.constant 0 : index
    %19 = vector.load %arg6[%c0_11, %c0_12] : memref<8x128xf32, #tpu.memory_space<vmem>>, vector<8x128xf32>
    tpu.vector_store %arg6[%c0_11, %c0_12], %18 {strides = array<i32>} : memref<8x128xf32, #tpu.memory_space<vmem>>, vector<8x128xf32>,
    return
  }
  func.func @transform_0(%arg0: i32) -> (i32, i32) {
    %c0_i32 = arith.constant 0 : i32
    %c0_i32_0 = arith.constant 0 : i32
    return %c0_i32, %arg0 : i32, i32
  }
  func.func @transform_1(%arg0: i32) -> (i32, i32) {
    %c0_i32 = arith.constant 0 : i32
    %c0_i32_0 = arith.constant 0 : i32
    %c0_i32_1 = arith.constant 0 : i32
    return %c0_i32, %c0_i32_0 : i32, i32
  }
  func.func @transform_2(%arg0: i32) -> (i32, i32) {
    %c0_i32 = arith.constant 0 : i32
    %c0_i32_0 = arith.constant 0 : i32
    %c0_i32_1 = arith.constant 0 : i32
    return %c0_i32, %c0_i32_0 : i32, i32
  }
  func.func @transform_3(%arg0: i32) -> (i32, i32) {
    %c0_i32 = arith.constant 0 : i32
    %c0_i32_0 = arith.constant 0 : i32
    %c0_i32_1 = arith.constant 0 : i32
    return %c0_i32, %c0_i32_0 : i32, i32
  }
  func.func @transform_4(%arg0: i32) -> (i32, i32) {
    %c0_i32 = arith.constant 0 : i32
    %c0_i32_0 = arith.constant 0 : i32
    %c0_i32_1 = arith.constant 0 : i32
    return %c0_i32, %c0_i32_0 : i32, i32
  }
  func.func @transform_5(%arg0: i32) -> (i32, i32) {
    %c0_i32 = arith.constant 0 : i32
    %c0_i32_0 = arith.constant 0 : i32
    return %c0_i32, %arg0 : i32, i32
  }
}

</mosaic_0001>

<bundles_post_ra>
// kernel: feedforward_pallas.1
= control target key start
LH: loop header
LB: loop body
LE: loop exit
PB: predicated region body
PF: predicated region fallthrough
CT: control target
= control target key end

     0   :  { %vm49_vm0 = vcmask 64512   ;;  %v234_v2 = vmov 0   ;;  %v235_v16 = vmov 1   ;;  %vm115_vm1 = vcmask 261120   ;;  %s321_s0 = inlined_call_operand.vmem [shape: f32[8,128], index: 0, kind: input, shape index: {}]   ;;  %s322_s1 = inlined_call_operand.vmem [shape: f32[32,8], index: 1, kind: input, shape index: {}]   ;;  %s323_s4 = inlined_call_operand.vmem [shape: f32[32,8], index: 4, kind: input, shape index: {}]   ;;  %s324_s2 = inlined_call_operand.vmem [shape: f32[32,32], index: 2, kind: input, shape index: {}]   ;;  %s325_s3 = inlined_call_operand.vmem [shape: f32[8,32], index: 3, kind: input, shape index: {}]   ;;  %s326_s5 = inlined_call_operand.vmem [shape: f32[8,128], index: 5, kind: output, shape index: {}]  }
   0x1   :  { %v20_v0 = vld [vmem:[%s321_s0] sm:$0xff]  ;;  %212 = vset.pattern.permute.xlu1 %v234_v2  ;;  %v28_v3 = vld [vmem:[%s322_s1 + $0x18] sm:$0xff]  ;;  %211 = vset.pattern.permute.xlu0 %v234_v2  ;;  %v22_v4 = vld [vmem:[%s323_s4 + $0x8] sm:$0xff]  ;;  %v236_v31 = vmov 2  }
   0x2   :  { %v25_v1 = vld [vmem:[%s322_s1] sm:$0xff]  ;;  %77 = vmatpush.msra.mxu0 %v20_v0  ;;  %203 = vmatpush.msra.mxu2 %v20_v0  ;;  %v24_v5 = vld [vmem:[%s323_s4 + $0x18] sm:$0xff]  ;;  %v26_v6 = vld [vmem:[%s322_s1 + $0x8] sm:$0xff] }
   0x3   :  { %194 = vmatmul.msk.f32.vlgmr.msra.gmra.mxu0 %vm49_vm0, %v25_v1  ;;  %197 = vmatmul.msk.f32.vlgmr.msra.gmra.mxu2 %vm49_vm0, %v28_v3  ;;  %v21_v7 = vld [vmem:[%s323_s4] sm:$0xff]  ;;  %v23_v8 = vld [vmem:[%s323_s4 + $0x10] sm:$0xff]  ;;  %v98_v29 = vld [vmem:[%s324_s2 + $0x18] sm:$0xff] }
   0x4   :  { %36 = vperm.xlu1 %212, %v22_v4   ;;  %46 = vperm.xlu0 %211, %v24_v5   ;;  %v27_v9 = vld [vmem:[%s322_s1 + $0x10] sm:$0xff]  ;;  %v95_v27 = vld [vmem:[%s324_s2] sm:$0xff]  ;;  %v96_v30 = vld [vmem:[%s324_s2 + $0x8] sm:$0xff] }
   0x5   :  { %213 = vset.pattern.permute.xlu2 %v235_v16  ;;  %v97_v26 = vld [vmem:[%s324_s2 + $0x10] sm:$0xff]  ;;  %v161_v47 = vld [vmem:[%s325_s3] sm:$0xff] }
   0x6   :  { %112 = vperm.xlu2 %213, %v24_v5  }
   0xb   :  { %195 = vmatmul.msk.f32.gmra.mxu0 %vm49_vm0, %v26_v6 }
   0xc   :  { %31 = vperm.xlu1 %212, %v21_v7   ;;  %41 = vperm.xlu0 %211, %v23_v8  }
   0xe   :  { %108 = vperm.xlu2 %213, %v23_v8  }
  0x13   :  { %196 = vmatmul.msk.f32.gmra.mxu0 %vm49_vm0, %v27_v9 }
  0x14   :  { %215 = vset.pattern.permute.xlu1 %v235_v16  ;;  %214 = vset.pattern.permute.xlu0 %v235_v16 }
  0x15   :  { %100 = vperm.xlu1 %215, %v21_v7   ;;  %104 = vperm.xlu0 %214, %v22_v4  }
  0x16   :  { %216 = vset.pattern.permute.xlu2 %v236_v31 }
  0x17   :  { %163 = vperm.xlu2 %216, %v21_v7  }
  0x1d   :  { %217 = vset.pattern.permute.xlu0 %v236_v31 }
  0x60   :  { %v113_v32 = vpop.permute.xlu2 %112 }
  0x68   :  { %v109_v35 = vpop.permute.xlu2 %108 }
  0x71   :  { %v164_v49 = vpop.permute.xlu2 %163 }
  0x76   :  { %v37_v11 = vpop.permute.xlu1 %36  ;;  %v47_v12 = vpop.permute.xlu0 %46 }
  0x7e   :  { %v32_v18 = vpop.permute.xlu1 %31  ;;  %v42_v19 = vpop.permute.xlu0 %41 }
  0x80   :  { %v79_v10 = vpop.f32.mrf.mxu0 }
  0x81   :  { %v80_v23 = vadd.f32 %v79_v10, %v32_v18 }
  0x86   :  { %v88_v13 = vpop.f32.mrf.mxu2 }
  0x87   :  { %v89_v14 = vadd.f32 %v88_v13, %v47_v12  ;;  %v105_v36 = vpop.permute.xlu0 %104  ;;  %v101_v42 = vpop.permute.xlu1 %100 }
  0x88   :  { %v82_v15 = vpop.f32.mrf.mxu0 }
  0x89   :  { %218 = vtanh.f32 %v89_v14  ;;  %v83_v21 = vadd.f32 %v82_v15, %v37_v11 }
  0x8f   :  { %v219_v17 = vpop.eup %218 }
  0x90   :  { %v85_v20 = vpop.f32.mrf.mxu0  ;;  %140 = vmatpush.msra.mxu1 %v219_v17  ;;  %204 = vmatpush.msra.mxu3 %v219_v17 }
  0x91   :  { %v86_v22 = vadd.f32 %v85_v20, %v42_v19 }
  0x93   :  { %220 = vtanh.f32 %v86_v22 }
  0x94   :  { %222 = vtanh.f32 %v83_v21 }
  0x95   :  { %224 = vtanh.f32 %v80_v23 }
  0x99   :  { %v221_v24 = vpop.eup %220 }
  0x9a   :  { %141 = vmatpush.msra.mxu1 %v221_v24  ;;  %205 = vmatpush.msra.mxu3 %v221_v24  ;;  %v223_v25 = vpop.eup %222 }
  0x9b   :  { %v225_v28 = vpop.eup %224 }
  0x9c   :  { %142 = vmatpush.msra.mxu1 %v223_v25  ;;  %206 = vmatpush.msra.mxu3 %v223_v25 }
  0x9e   :  { %143 = vmatpush.msra.mxu1 %v225_v28  ;;  %207 = vmatpush.msra.mxu3 %v225_v28 }
  0x9f   :  { %200 = vmatmul.msk.f32.vlgmr.msra.gmra.mxu3 %vm115_vm1, %v97_v26  ;;  %198 = vmatmul.msk.f32.vlgmr.msra.gmra.mxu1 %vm115_vm1, %v95_v27 }
  0xa7   :  { %201 = vmatmul.msk.f32.gmra.mxu3 %vm115_vm1, %v98_v29  ;;  %199 = vmatmul.msk.f32.gmra.mxu1 %vm115_vm1, %v96_v30 }
 0x11c   :  { %v145_v33 = vpop.f32.mrf.mxu1 }
 0x11d   :  { %v146_v43 = vadd.f32 %v145_v33, %v101_v42 }
 0x122   :  { %v151_v34 = vpop.f32.mrf.mxu3 }
 0x123   :  { %v152_v38 = vadd.f32 %v151_v34, %v109_v35 }
 0x124   :  { %v148_v37 = vpop.f32.mrf.mxu1 }
 0x125   :  { %v149_v41 = vadd.f32 %v148_v37, %v105_v36 }
 0x12a   :  { %v154_v39 = vpop.f32.mrf.mxu3 }
 0x12b   :  { %v155_v40 = vadd.f32 %v154_v39, %v113_v32 }
 0x12d   :  { %226 = vtanh.f32 %v155_v40 }
 0x12e   :  { %228 = vtanh.f32 %v152_v38 }
 0x12f   :  { %230 = vtanh.f32 %v149_v41 }
 0x130   :  { %232 = vtanh.f32 %v146_v43 }
 0x133   :  { %v227_v44 = vpop.eup %226 }
 0x134   :  { %v229_v45 = vpop.eup %228  ;;  %181 = vmatpush.msrb.mxu2 %v227_v44 }
 0x135   :  { %v231_v46 = vpop.eup %230 }
 0x136   :  { %182 = vmatpush.msrb.mxu2 %v229_v45  ;;  %v233_v48 = vpop.eup %232 }
 0x138   :  { %183 = vmatpush.msrb.mxu2 %v231_v46 }
 0x13a   :  { %184 = vmatpush.msrb.mxu2 %v233_v48 }
 0x13b   :  { %202 = vmatmul.msk.f32.vlgmr.msrb.gmra.mxu2 %vm115_vm1, %v161_v47 }
 0x1be   :  { %v186_v50 = vpop.f32.mrf.mxu2 }
 0x1bf   :  { %v187_v51 = vadd.f32 %v186_v50, %v164_v49 }
 0x1c1   :  { %189 = vst [vmem:[%s326_s5] sm:$0xff] %v187_v51 }

</bundles_post_ra>
